<compile_context>
chip_gen: v6e
topology: v6e:2x2x1
jax: 0.10.0
libtpu: 0.0.40
codegen_flags: <defaults>
</compile_context>

<pallas_src>
import math
import functools

import jax
import jax.numpy as jnp
from jax.experimental import pallas as pl
from jax.experimental.pallas import tpu as pltpu

_AMP = 1.0 / math.sqrt(2.0 * math.pi)
_SQRT2 = math.sqrt(2.0)
_LOG_INV_AMP = 0.5 * math.log(2.0 * math.pi)   # == -log(_AMP)

_LANES = 128
_MAX_TILE_ROWS = 1024    # 1024 x 128 f32 = 512 KiB per stream per buffer
_NUM_CORES = 2           # leading "parallel" axis (v7x megacore); harmless on 1-TC chips


def _row_align(dtype):
    """Sublane packing granularity: 8 rows for 32-bit, 16 for 16-bit, 32 for 8-bit."""
    return 8 * max(1, 4 // jnp.dtype(dtype).itemsize)


def _round_up(x, m):
    return ((x + m - 1) // m) * m


def _to_slab(x_flat, pad_value, min_rows):
    """Lane-dense (rows, 128) view of a flat array.

    Pads only to the next multiple of 128 (plus a small `min_rows` floor for
    tiny inputs); row-ragged tile boundaries are masked in-kernel, so no
    full-tile pad copy is ever materialized.  If len(x) is already a multiple
    of 128 (and >= min_rows*128), the reshape is free (no HBM copy).
    """
    n = x_flat.shape[0]
    rows = max(-(-n // _LANES), min_rows)
    padded = rows * _LANES
    if padded != n:
        x_flat = jnp.pad(x_flat, (0, padded - n), constant_values=pad_value)
    return x_flat.reshape(rows, _LANES)


def _rle_kernel(*refs, residual, tile_r, tr_nf, rows_main, rows_nf, g2, d_factor):
    if residual:
        (pred_ref, sig_ref, gt_ref, w_ref, nf_ref, w0_ref,
         loss_ref, wsum_ref) = refs
    else:
        (w_ref, nf_ref, w0_ref, loss_ref, wsum_ref) = refs

    c = pl.program_id(0)                # core / partial-sum index ("parallel")
    i = pl.program_id(1)                # row-tile index within this core ("arbitrary")
    blk = c * g2 + i                    # logical (unclamped) row-tile index

    # Output blocks are resident across the i axis -> use them as accumulators.
    @pl.when(i == 0)
    def _init():
        loss_ref[...] = jnp.zeros_like(loss_ref)
        wsum_ref[...] = jnp.zeros_like(wsum_ref)

    # ---- per-coordinate slabs: sum(w) and (residual) sum(logQ * w) ----------
    w = w_ref[...].astype(jnp.float32)
    row_id = jax.lax.broadcasted_iota(jnp.int32, (tile_r, _LANES), 0) + blk * tile_r
    valid = row_id < rows_main
    wsum_ref[...] += jnp.sum(
        jnp.where(valid, w, 0.0).reshape(tile_r // 8, 8, _LANES), axis=0)

    if residual:
        pred = pred_ref[...].astype(jnp.float32)
        sig = sig_ref[...].astype(jnp.float32)
        gt = gt_ref[...].astype(jnp.float32)
        # logQ = log(sigma) + log(1/amp) + |gt - pred| / (sqrt(2)*sigma + 1e-9)
        inv = pl.reciprocal(_SQRT2 * sig + 1e-9, approx=False)
        logq = jnp.log(sig) + _LOG_INV_AMP + jnp.abs(gt - pred) * inv
        contrib = jnp.where(valid, logq * w, 0.0)
        loss_ref[...] += jnp.sum(contrib.reshape(tile_r // 8, 8, _LANES), axis=0)

    # ---- per-joint slabs: sum(nf * w0); broadcasts over D in the residual path
    nf = nf_ref[...].astype(jnp.float32)
    w0 = w0_ref[...].astype(jnp.float32)
    row_id_nf = jax.lax.broadcasted_iota(jnp.int32, (tr_nf, _LANES), 0) + blk * tr_nf
    valid_nf = row_id_nf < rows_nf
    nf_contrib = jnp.where(valid_nf, nf * w0, 0.0) * d_factor
    loss_ref[...] += jnp.sum(nf_contrib.reshape(tr_nf // 8, 8, _LANES), axis=0)


def rle_loss(nf_loss, pred_jts, sigma, target_uv, target_uv_weight,
             *, residual=True, size_average=True):
    """JAX/Pallas equivalent of RLELoss.forward.

    nf_loss:          (B, K, 1)
    pred_jts:         (B, K, D)
    sigma:            (B, K, D)
    target_uv:        any shape reshapable to (B, K, D)
    target_uv_weight: any shape reshapable to (B, K, D)
    Returns a scalar float32 loss.
    """
    B, K, D = pred_jts.shape
    N = B * K

    gt_uv = jnp.reshape(target_uv, (B, K, D))
    gt_w = jnp.reshape(target_uv_weight, (B, K, D))

    # ---- static tiling parameters -------------------------------------------
    main_ins = [pred_jts, sigma, gt_uv, gt_w] if residual else [gt_w]
    align_main = max(_row_align(x.dtype) for x in main_ins)
    align_nf = max(_row_align(nf_loss.dtype), _row_align(gt_w.dtype))

    rows_main = max(-(-(N * D) // _LANES), align_main)
    tile_r = (min(_MAX_TILE_ROWS, rows_main) // align_main) * align_main
    g = pl.cdiv(rows_main, tile_r)

    tr_nf = _round_up(-(-tile_r // D), align_nf)
    rows_nf = max(-(-N // _LANES), tr_nf)

    g2 = pl.cdiv(g, _NUM_CORES)
    grid = (_NUM_CORES, g2)

    max_blk_main = g - 1
    max_blk_nf = pl.cdiv(rows_nf, tr_nf) - 1

    # Clamp DMA block starts in-bounds; overshoot tiles are fully masked in-kernel.
    def main_map(c, i):
        return (jnp.minimum(c * g2 + i, max_blk_main), 0)

    def nf_map(c, i):
        return (jnp.minimum(c * g2 + i, max_blk_nf), 0)

    main_spec = pl.BlockSpec((tile_r, _LANES), main_map)
    nf_spec = pl.BlockSpec((tr_nf, _LANES), nf_map)
    out_spec = pl.BlockSpec((8, _LANES), lambda c, i: (c, 0))

    # ---- lane-dense operand slabs (native dtypes, cast to f32 in-kernel) ----
    w_s = _to_slab(jnp.reshape(gt_w, (N * D,)), 0.0, align_main)
    nf_s = _to_slab(jnp.reshape(nf_loss, (N,)), 0.0, rows_nf)
    w0_s = _to_slab(jnp.reshape(gt_w[:, :, 0], (N,)), 0.0, rows_nf)
    operands = [w_s, nf_s, w0_s]
    in_specs = [main_spec, nf_spec, nf_spec]
    if residual:
        pred_s = _to_slab(jnp.reshape(pred_jts, (N * D,)), 0.0, align_main)
        sig_s = _to_slab(jnp.reshape(sigma, (N * D,)), 1.0, align_main)
        gt_s = _to_slab(jnp.reshape(gt_uv, (N * D,)), 0.0, align_main)
        operands = [pred_s, sig_s, gt_s] + operands
        in_specs = [main_spec, main_spec, main_spec] + in_specs

    kernel = functools.partial(
        _rle_kernel, residual=residual, tile_r=tile_r, tr_nf=tr_nf,
        rows_main=rows_main, rows_nf=rows_nf, g2=g2,
        d_factor=float(D) if residual else 1.0)

    loss_parts, w_parts = pl.pallas_call(
        kernel,
        grid=grid,
        in_specs=in_specs,
        out_specs=(out_spec, out_spec),
        out_shape=(jax.ShapeDtypeStruct((_NUM_CORES * 8, _LANES), jnp.float32),
                   jax.ShapeDtypeStruct((_NUM_CORES * 8, _LANES), jnp.float32)),
        compiler_params=pltpu.CompilerParams(
            dimension_semantics=("parallel", "arbitrary")),
    )(*operands)

    # Tiny epilogue in plain JAX: combine per-core lane partials, gate, normalize.
    total = jnp.sum(loss_parts)
    if size_average:
        wsum = jnp.sum(w_parts)
        total = jnp.where(wsum > 0, total / B, total)
    return total


def _reference(nf_loss, pred_jts, sigma, target_uv, target_uv_weight,
               residual=True, size_average=True):
    """Pure-JAX reference mirroring the torch forward."""
    B, K, D = pred_jts.shape
    gt_uv = jnp.reshape(target_uv, (B, K, D))
    gt_w = jnp.reshape(target_uv_weight, (B, K, D))
    nf = nf_loss * gt_w[:, :, :1]
    if residual:
        logq = jnp.log(sigma / _AMP) + jnp.abs(gt_uv - pred_jts) / (_SQRT2 * sigma + 1e-9)
        loss = nf + logq * gt_w
    else:
        loss = nf
    if size_average and (jnp.sum(gt_w) > 0):
        return jnp.sum(loss) / B
    return jnp.sum(loss)


if __name__ == "__main__":
    # Small deterministic example: batch=2, joints=8, coords=2.
    B, K, D = 2, 8, 2
    key = jax.random.PRNGKey(0)
    k1, k2, k3, k4, k5 = jax.random.split(key, 5)

    nf_loss = jax.random.normal(k1, (B, K, 1), dtype=jnp.float32)
    pred_jts = jax.random.normal(k2, (B, K, D), dtype=jnp.float32) * 0.5
    sigma = jax.random.uniform(k3, (B, K, D), dtype=jnp.float32,
                               minval=0.1, maxval=1.0)
    target_uv = jax.random.normal(k4, (B, K * D), dtype=jnp.float32) * 0.5
    target_uv_weight = (jax.random.uniform(k5, (B, K * D), dtype=jnp.float32)
                        > 0.2).astype(jnp.float32)

    # residual=True path
    out = rle_loss(nf_loss, pred_jts, sigma, target_uv, target_uv_weight,
                   residual=True, size_average=True)
    out = jax.block_until_ready(out)
    ref = _reference(nf_loss, pred_jts, sigma, target_uv, target_uv_weight,
                     residual=True, size_average=True)
    assert jnp.allclose(out, ref, rtol=1e-5, atol=1e-5), (out, ref)

    # residual=False path
    out2 = rle_loss(nf_loss, pred_jts, sigma, target_uv, target_uv_weight,
                    residual=False, size_average=True)
    out2 = jax.block_until_ready(out2)
    ref2 = _reference(nf_loss, pred_jts, sigma, target_uv, target_uv_weight,
                      residual=False, size_average=True)
    assert jnp.allclose(out2, ref2, rtol=1e-5, atol=1e-5), (out2, ref2)

    print("KERNEL_OK")
</pallas_src>

<mosaic_0001>
module attributes {stable_mosaic.version = 11 : i64} {
  func.func @_rle_kernel(%arg0: i32, %arg1: i32, %arg2: memref<8x128xf32, #tpu.memory_space<vmem>>, %arg3: memref<8x128xf32, #tpu.memory_space<vmem>>, %arg4: memref<8x128xf32, #tpu.memory_space<vmem>>, %arg5: memref<8x128xf32, #tpu.memory_space<vmem>>, %arg6: memref<8x128xf32, #tpu.memory_space<vmem>>, %arg7: memref<8x128xf32, #tpu.memory_space<vmem>>, %arg8: memref<8x128xf32, #tpu.memory_space<vmem>>, %arg9: memref<8x128xf32, #tpu.memory_space<vmem>>) attributes {dimension_semantics = [#tpu.dimension_semantics<parallel>, #tpu.dimension_semantics<arbitrary>], iteration_bounds = array<i64: 2, 1>, scalar_prefetch = 0 : i64, scratch_operands = 0 : i64, tpu.core_type = #tpu.core_type<tc>, window_params = [{transform_indices = @transform_0, window_bounds = array<i64: 8, 128>}, {transform_indices = @transform_1, window_bounds = array<i64: 8, 128>}, {transform_indices = @transform_2, window_bounds = array<i64: 8, 128>}, {transform_indices = @transform_3, window_bounds = array<i64: 8, 128>}, {transform_indices = @transform_4, window_bounds = array<i64: 8, 128>}, {transform_indices = @transform_5, window_bounds = array<i64: 8, 128>}, {transform_indices = @transform_6, window_bounds = array<i64: 8, 128>}, {transform_indices = @transform_7, window_bounds = array<i64: 8, 128>}]} {
    %c1_i32 = arith.constant 1 : i32
    %0 = arith.muli %arg0, %c1_i32 : i32
    %1 = arith.addi %0, %arg1 : i32
    %c0_i32 = arith.constant 0 : i32
    %2 = arith.cmpi eq, %arg1, %c0_i32 : i32
    %3 = arith.extui %2 : i1 to i32
    %c0_i32_0 = arith.constant 0 : i32
    %4 = arith.cmpi ne, %3, %c0_i32_0 : i32
    scf.if %4 {
      %cst_36 = arith.constant 0.000000e+00 : f32
      %60 = vector.broadcast %cst_36 : f32 to vector<8x128xf32>
      %c0_37 = arith.constant 0 : index
      %c0_38 = arith.constant 0 : index
      %61 = vector.load %arg8[%c0_37, %c0_38] : memref<8x128xf32, #tpu.memory_space<vmem>>, vector<8x128xf32>
      tpu.vector_store %arg8[%c0_37, %c0_38], %60 {strides = array<i32>} : memref<8x128xf32, #tpu.memory_space<vmem>>, vector<8x128xf32>,
      %cst_39 = arith.constant 0.000000e+00 : f32
      %62 = vector.broadcast %cst_39 : f32 to vector<8x128xf32>
      %c0_40 = arith.constant 0 : index
      %c0_41 = arith.constant 0 : index
      %63 = vector.load %arg9[%c0_40, %c0_41] : memref<8x128xf32, #tpu.memory_space<vmem>>, vector<8x128xf32>
      tpu.vector_store %arg9[%c0_40, %c0_41], %62 {strides = array<i32>} : memref<8x128xf32, #tpu.memory_space<vmem>>, vector<8x128xf32>,
    } else {
    }
    %c0 = arith.constant 0 : index
    %c0_1 = arith.constant 0 : index
    %5 = vector.load %arg5[%c0, %c0_1] : memref<8x128xf32, #tpu.memory_space<vmem>>, vector<8x128xf32>
    %6 = tpu.iota {dimensions = array<i32: 0>} : vector<8x128xi32>
    %c8_i32 = arith.constant 8 : i32
    %7 = arith.muli %1, %c8_i32 : i32
    %8 = vector.broadcast %7 : i32 to vector<8x128xi32>
    %9 = arith.addi %6, %8 : vector<8x128xi32>
    %c8_i32_2 = arith.constant 8 : i32
    %10 = vector.broadcast %c8_i32_2 : i32 to vector<8x128xi32>
    %11 = arith.cmpi slt, %9, %10 : vector<8x128xi32>
    %c0_3 = arith.constant 0 : index
    %c0_4 = arith.constant 0 : index
    %12 = vector.load %arg9[%c0_3, %c0_4] : memref<8x128xf32, #tpu.memory_space<vmem>>, vector<8x128xf32>
    %cst = arith.constant 0.000000e+00 : f32
    %13 = vector.broadcast %cst : f32 to vector<8x128xf32>
    %14 = arith.select %11, %5, %13 : vector<8x128xi1>, vector<8x128xf32>
    %15 = vector.shape_cast %14 : vector<8x128xf32> to vector<1x8x128xf32>
    %cst_5 = arith.constant dense<0.000000e+00> : vector<8x128xf32>
    %16 = vector.multi_reduction <add>, %15, %cst_5 [0] : vector<1x8x128xf32> to vector<8x128xf32>
    %17 = arith.addf %12, %16 : vector<8x128xf32>
    %c0_6 = arith.constant 0 : index
    %c0_7 = arith.constant 0 : index
    %18 = vector.load %arg9[%c0_6, %c0_7] : memref<8x128xf32, #tpu.memory_space<vmem>>, vector<8x128xf32>
    tpu.vector_store %arg9[%c0_6, %c0_7], %17 {strides = array<i32>} : memref<8x128xf32, #tpu.memory_space<vmem>>, vector<8x128xf32>,
    %c0_8 = arith.constant 0 : index
    %c0_9 = arith.constant 0 : index
    %19 = vector.load %arg2[%c0_8, %c0_9] : memref<8x128xf32, #tpu.memory_space<vmem>>, vector<8x128xf32>
    %c0_10 = arith.constant 0 : index
    %c0_11 = arith.constant 0 : index
    %20 = vector.load %arg3[%c0_10, %c0_11] : memref<8x128xf32, #tpu.memory_space<vmem>>, vector<8x128xf32>
    %c0_12 = arith.constant 0 : index
    %c0_13 = arith.constant 0 : index
    %21 = vector.load %arg4[%c0_12, %c0_13] : memref<8x128xf32, #tpu.memory_space<vmem>>, vector<8x128xf32>
    %cst_14 = arith.constant 1.41421354 : f32
    %22 = vector.broadcast %cst_14 : f32 to vector<8x128xf32>
    %23 = arith.mulf %22, %20 : vector<8x128xf32>
    %cst_15 = arith.constant 9.99999971E-10 : f32
    %24 = vector.broadcast %cst_15 : f32 to vector<8x128xf32>
    %25 = arith.addf %23, %24 : vector<8x128xf32>
    %26 = tpu.reciprocal %25 : vector<8x128xf32> -> vector<8x128xf32>
    %27 = math.log %20 : vector<8x128xf32>
    %cst_16 = arith.constant 0.918938517 : f32
    %28 = vector.broadcast %cst_16 : f32 to vector<8x128xf32>
    %29 = arith.addf %27, %28 : vector<8x128xf32>
    %30 = arith.subf %21, %19 : vector<8x128xf32>
    %31 = math.absf %30 : vector<8x128xf32>
    %32 = arith.mulf %31, %26 : vector<8x128xf32>
    %33 = arith.addf %29, %32 : vector<8x128xf32>
    %34 = arith.mulf %33, %5 : vector<8x128xf32>
    %cst_17 = arith.constant 0.000000e+00 : f32
    %35 = vector.broadcast %cst_17 : f32 to vector<8x128xf32>
    %36 = arith.select %11, %34, %35 : vector<8x128xi1>, vector<8x128xf32>
    %c0_18 = arith.constant 0 : index
    %c0_19 = arith.constant 0 : index
    %37 = vector.load %arg8[%c0_18, %c0_19] : memref<8x128xf32, #tpu.memory_space<vmem>>, vector<8x128xf32>
    %38 = vector.shape_cast %36 : vector<8x128xf32> to vector<1x8x128xf32>
    %cst_20 = arith.constant dense<0.000000e+00> : vector<8x128xf32>
    %39 = vector.multi_reduction <add>, %38, %cst_20 [0] : vector<1x8x128xf32> to vector<8x128xf32>
    %40 = arith.addf %37, %39 : vector<8x128xf32>
    %c0_21 = arith.constant 0 : index
    %c0_22 = arith.constant 0 : index
    %41 = vector.load %arg8[%c0_21, %c0_22] : memref<8x128xf32, #tpu.memory_space<vmem>>, vector<8x128xf32>
    tpu.vector_store %arg8[%c0_21, %c0_22], %40 {strides = array<i32>} : memref<8x128xf32, #tpu.memory_space<vmem>>, vector<8x128xf32>,
    %c0_23 = arith.constant 0 : index
    %c0_24 = arith.constant 0 : index
    %42 = vector.load %arg6[%c0_23, %c0_24] : memref<8x128xf32, #tpu.memory_space<vmem>>, vector<8x128xf32>
    %c0_25 = arith.constant 0 : index
    %c0_26 = arith.constant 0 : index
    %43 = vector.load %arg7[%c0_25, %c0_26] : memref<8x128xf32, #tpu.memory_space<vmem>>, vector<8x128xf32>
    %44 = tpu.iota {dimensions = array<i32: 0>} : vector<8x128xi32>
    %c8_i32_27 = arith.constant 8 : i32
    %45 = arith.muli %1, %c8_i32_27 : i32
    %46 = vector.broadcast %45 : i32 to vector<8x128xi32>
    %47 = arith.addi %44, %46 : vector<8x128xi32>
    %c8_i32_28 = arith.constant 8 : i32
    %48 = vector.broadcast %c8_i32_28 : i32 to vector<8x128xi32>
    %49 = arith.cmpi slt, %47, %48 : vector<8x128xi32>
    %50 = arith.mulf %42, %43 : vector<8x128xf32>
    %cst_29 = arith.constant 0.000000e+00 : f32
    %51 = vector.broadcast %cst_29 : f32 to vector<8x128xf32>
    %52 = arith.select %49, %50, %51 : vector<8x128xi1>, vector<8x128xf32>
    %cst_30 = arith.constant 2.000000e+00 : f32
    %53 = vector.broadcast %cst_30 : f32 to vector<8x128xf32>
    %54 = arith.mulf %52, %53 : vector<8x128xf32>
    %c0_31 = arith.constant 0 : index
    %c0_32 = arith.constant 0 : index
    %55 = vector.load %arg8[%c0_31, %c0_32] : memref<8x128xf32, #tpu.memory_space<vmem>>, vector<8x128xf32>
    %56 = vector.shape_cast %54 : vector<8x128xf32> to vector<1x8x128xf32>
    %cst_33 = arith.constant dense<0.000000e+00> : vector<8x128xf32>
    %57 = vector.multi_reduction <add>, %56, %cst_33 [0] : vector<1x8x128xf32> to vector<8x128xf32>
    %58 = arith.addf %55, %57 : vector<8x128xf32>
    %c0_34 = arith.constant 0 : index
    %c0_35 = arith.constant 0 : index
    %59 = vector.load %arg8[%c0_34, %c0_35] : memref<8x128xf32, #tpu.memory_space<vmem>>, vector<8x128xf32>
    tpu.vector_store %arg8[%c0_34, %c0_35], %58 {strides = array<i32>} : memref<8x128xf32, #tpu.memory_space<vmem>>, vector<8x128xf32>,
    return
  }
  func.func @transform_0(%arg0: i32, %arg1: i32) -> (i32, i32) {
    %c1_i32 = arith.constant 1 : i32
    %0 = arith.muli %arg0, %c1_i32 : i32
    %1 = arith.addi %0, %arg1 : i32
    %c0_i32 = arith.constant 0 : i32
    %2 = arith.minsi %1, %c0_i32 : i32
    %c0_i32_0 = arith.constant 0 : i32
    %c0_i32_1 = arith.constant 0 : i32
    return %2, %c0_i32_0 : i32, i32
  }
  func.func @transform_1(%arg0: i32, %arg1: i32) -> (i32, i32) {
    %c1_i32 = arith.constant 1 : i32
    %0 = arith.muli %arg0, %c1_i32 : i32
    %1 = arith.addi %0, %arg1 : i32
    %c0_i32 = arith.constant 0 : i32
    %2 = arith.minsi %1, %c0_i32 : i32
    %c0_i32_0 = arith.constant 0 : i32
    %c0_i32_1 = arith.constant 0 : i32
    return %2, %c0_i32_0 : i32, i32
  }
  func.func @transform_2(%arg0: i32, %arg1: i32) -> (i32, i32) {
    %c1_i32 = arith.constant 1 : i32
    %0 = arith.muli %arg0, %c1_i32 : i32
    %1 = arith.addi %0, %arg1 : i32
    %c0_i32 = arith.constant 0 : i32
    %2 = arith.minsi %1, %c0_i32 : i32
    %c0_i32_0 = arith.constant 0 : i32
    %c0_i32_1 = arith.constant 0 : i32
    return %2, %c0_i32_0 : i32, i32
  }
  func.func @transform_3(%arg0: i32, %arg1: i32) -> (i32, i32) {
    %c1_i32 = arith.constant 1 : i32
    %0 = arith.muli %arg0, %c1_i32 : i32
    %1 = arith.addi %0, %arg1 : i32
    %c0_i32 = arith.constant 0 : i32
    %2 = arith.minsi %1, %c0_i32 : i32
    %c0_i32_0 = arith.constant 0 : i32
    %c0_i32_1 = arith.constant 0 : i32
    return %2, %c0_i32_0 : i32, i32
  }
  func.func @transform_4(%arg0: i32, %arg1: i32) -> (i32, i32) {
    %c1_i32 = arith.constant 1 : i32
    %0 = arith.muli %arg0, %c1_i32 : i32
    %1 = arith.addi %0, %arg1 : i32
    %c0_i32 = arith.constant 0 : i32
    %2 = arith.minsi %1, %c0_i32 : i32
    %c0_i32_0 = arith.constant 0 : i32
    %c0_i32_1 = arith.constant 0 : i32
    return %2, %c0_i32_0 : i32, i32
  }
  func.func @transform_5(%arg0: i32, %arg1: i32) -> (i32, i32) {
    %c1_i32 = arith.constant 1 : i32
    %0 = arith.muli %arg0, %c1_i32 : i32
    %1 = arith.addi %0, %arg1 : i32
    %c0_i32 = arith.constant 0 : i32
    %2 = arith.minsi %1, %c0_i32 : i32
    %c0_i32_0 = arith.constant 0 : i32
    %c0_i32_1 = arith.constant 0 : i32
    return %2, %c0_i32_0 : i32, i32
  }
  func.func @transform_6(%arg0: i32, %arg1: i32) -> (i32, i32) {
    %c0_i32 = arith.constant 0 : i32
    %c0_i32_0 = arith.constant 0 : i32
    return %arg0, %c0_i32 : i32, i32
  }
  func.func @transform_7(%arg0: i32, %arg1: i32) -> (i32, i32) {
    %c0_i32 = arith.constant 0 : i32
    %c0_i32_0 = arith.constant 0 : i32
    return %arg0, %c0_i32 : i32, i32
  }
}

</mosaic_0001>

<bundles_post_ra>
// kernel: tpu_custom_call.1
= control target key start
LH: loop header
LB: loop body
LE: loop exit
PB: predicated region body
PF: predicated region fallthrough
CT: control target
= control target key end

     0   :  { %s1635_s0 = inlined_call_operand.hbm [shape: f32[8,128], index: 0, kind: input, shape index: {}]   ;;  %s1636_s1 = inlined_call_operand.hbm [shape: f32[8,128], index: 1, kind: input, shape index: {}]   ;;  %s1637_s2 = inlined_call_operand.hbm [shape: f32[8,128], index: 2, kind: input, shape index: {}]   ;;  %s1638_s3 = inlined_call_operand.hbm [shape: f32[8,128], index: 3, kind: input, shape index: {}]   ;;  %s1639_s4 = inlined_call_operand.hbm [shape: f32[8,128], index: 4, kind: input, shape index: {}]   ;;  %s1640_s5 = inlined_call_operand.vmem [shape: f32[8,128], index: 5, kind: input, shape index: {}]   ;;  %s1641_s6 = inlined_call_operand.hbm [shape: f32[16,128], index: 6, kind: output, shape index: {0}]   ;;  %s1642_s7 = inlined_call_operand.hbm [shape: f32[16,128], index: 7, kind: output, shape index: {1}]  }
   0x1   :  { %1650 = sst [smem:[#allocation24_spill]] %s1636_s1 }
   0x2   :  { %1651 = sst [smem:[#allocation25_spill]] %s1638_s3 }
   0x3   :  { %13 = vsyncpa [#allocation3], 0 }
   0x4   :  { %15 = vsyncpa [#allocation3 + $0x1], 0 }
   0x5   :  { %16 = vsyncpa [#allocation6], 0 }
   0x6   :  { %18 = vsyncpa [#allocation6 + $0x1], 0 }
   0x7   :  { %19 = vsyncpa [#allocation9], 0 }
   0x8   :  { %21 = vsyncpa [#allocation9 + $0x1], 0 }
   0x9   :  { %22 = vsyncpa [#allocation4], 0 }
   0xa   :  { %24 = vsyncpa [#allocation4 + $0x1], 0 }
   0xb   :  { %25 = vsyncpa [#allocation13], 0 }
   0xc   :  { %27 = vsyncpa [#allocation13 + $0x1], 0  ;;  %s1321_s24 = smov 0   ;;  %s1323_s25 = smov 0  }
   0xd   :  { %s1325_s26 = smov 0   ;;  %s1327_s27 = smov 0  }
   0xe   :  { %s1329_s28 = smov 0   ;;  %s1331_s29 = smov 0  }
   0xf   :  { %s1333_s30 = smov 0   ;;  %s1335_s8 = smov 0  }
  0x10 LB: > { %1652 = sst [smem:[#allocation19_spill]] %s1252_s26  ;;  %s1360_s9 = sadd.s32 4294967295, %s1272_s8   ;;  %s1272_s8 = sphi %s1335_s8, %s33_s8   ;;  %s1268_s30 = sphi %s1333_s30, %s1676_s30   ;;  %s1264_s29 = sphi %s1331_s29, %s1675_s29   ;;  %s1260_s28 = sphi %s1329_s28, %s1625_s28   ;;  %s1256_s27 = sphi %s1327_s27, %s1679_s27   ;;  %s1252_s26 = sphi %s1325_s26, %s1674_s26   ;;  %s1248_s25 = sphi %s1323_s25, %s1678_s25   ;;  %s1244_s24 = sphi %s1321_s24, %s1677_s24  }
  0x11   : > { %1653 = sst [smem:[#allocation20_spill]] %s1268_s30  ;;  %s845_s10 = sadd.s32 4294967294, %s1272_s8  }
  0x12   : > { %1654 = sst [smem:[#allocation21_spill]] %s1272_s8  ;;  %s45_s11 = sadd.s32 1, %s1268_s30 }
  0x13   : > { %p47_p0 = scmp.ge.s32.totalorder %s45_s11, 2  ;;  %p1241_p1 = scmp.ne.s32.totalorder %s1260_s28, 0 }
  0x14   : > { %p66_p2 = scmp.eq.s32.totalorder %s1272_s8, 0  ;;  %p71_p3 = scmp.ne.s32.totalorder %s1260_s28, %s1256_s27 }
  0x15   : > { %s1681_s11 = smov (%p47_p0, %s45_s11), 0  ;;  %p72_p5 = scmp.eq.s32.totalorder %s1360_s9, 0 }
  0x16   : > { %1655 = sst [smem:[#allocation22_spill]] %s1681_s11  ;;  %p1369_p4 = por %p1241_p1, %p66_p2 }
  0x17   : > { %p1374_p6 = por %p72_p5, %p71_p3  ;;  %s241_s14 = ssub.s32 %s1268_s30, %s1681_s11 }
  0x18   : > { %p242_p7 = scmp.eq.s32.totalorder %s241_s14, 0  ;;  %s244_s15 = sadd.s32 1, %s1252_s26 }
  0x19   : > { %s1657_s13 = scalar_select %p1374_p6, 1, 0 }
  0x1a   : > { %s1382_s16 = scalar_select %p242_p7, %s1252_s26, %s244_s15  }
  0x1b   : > { %p254_p8 = scmp.ne.s32.totalorder %s1252_s26, %s1248_s25  ;;  %p255_p9 = scmp.eq.s32.totalorder %s1360_s9, 1 }
  0x1c   : > { %1658 = sst [smem:[#allocation23_spill]] %s1382_s16  ;;  %p260_p10 = scmp.ne.s32.totalorder %s1248_s25, %s1244_s24 }
  0x1d   : > { %p261_p11 = scmp.eq.s32.totalorder %s845_s10, 1  ;;  %p1389_p12 = por %p255_p9, %p254_p8 }
  0x1e   : > { %p914_p1 = scmp.lt.s32.totalorder %s1272_s8, 2  ;;  %s328_s20 = sand.u32 1, %s1272_s8  }
  0x1f   : > { %s1659_s17 = scalar_select %p1389_p12, 1, 0 }
  0x20   : > { %p1394_p0 = por %p261_p11, %p260_p10  ;;  %p1401_p2 = pnand %p914_p1, %p1369_p4 }
  0x21   : > { %s1274_s21 = smov [#allocation5]   ;;  %s1409_s23 = scalar_lea.sflag [#allocation6], %s328_s20 }
  0x22   : > { %s1660_s18 = scalar_select %p1394_p0, 1, 0 }
  0x23   : > { %s342_s22 = sshll.u32 %s1274_s21, 4  ;;  %s1662_s1 = sld [smem:[#allocation24_spill]]  ;;  %s343_s22 = int_to_ptr.vmem [resolvable:$true] %s342_s22 }
  0x24   : > { %p1419_p5 = pneg %p1401_p2 }
  0x29   : > { %s993_s14 = scalar_lea.hbm %s1662_s1, 128 }
  0x2a   : > { %p994_p4 = scmp.ne.s32.totalorder %s1662_s1, %s993_s14  ;;  %p1000_p9 = scmp.lt.s32.totalorder %s993_s14, %s993_s14 }
  0x2c   : > { %p996_p7 = pnand %p1419_p5, %p994_p4 }
  0x2e   : > { %p997_p8 = pneg %p996_p7 }
  0x30   : > { %p1002_p10 = pnand %p1000_p9, %p997_p8 }
  0x32   : > { %1005 = shalt.err (!%p1002_p10)
}
  0x33   : > { %s1006_s21 = scalar_lea.vmem %s343_s22, 128  ;;  %s1013_s11 = scalar_lea.vmem %s343_s22, 256 }
  0x34   : > { %p1007_p11 = scmp.ne.s32.totalorder %s343_s22, %s1006_s21  ;;  %p1014_p3 = scmp.lt.s32.totalorder %s343_s22, %s343_s22 }
  0x35   : > { %p1015_p0 = scmp.lt.s32.totalorder %s1013_s11, %s1006_s21 }
  0x36   : > { %p1009_p1 = pnand %p1007_p11, %p1419_p5 }
  0x37   : > { %p1016_p12 = por %p1015_p0, %p1014_p3 }
  0x38   : > { %p1010_p13 = pneg %p1009_p1 }
  0x3a   : > { %p1017_p6 = pnand %p1016_p12, %p1010_p13 }
  0x3c   : > { %1020 = shalt.err (!%p1017_p6)
}
  0x3d   : > { %897 = dma.hbm_to_vmem [thread:$0]  (!%p1401_p2), %s1662_s1, 128, %s343_s22, %s1409_s23  }
  0x3e   : > { %p423_p4 = scmp.lt.s32.totalorder %s1272_s8, 3  ;;  %p1664_p7 = scmp.ge.s32.totalorder %s1272_s8, 1 }
  0x3f   : > { %s1275_s15 = smov [#allocation8]   ;;  %s1442_s11 = scalar_lea.sflag [#allocation9], %s328_s20 }
  0x40   : > { %p1436_p8 = pnand %p1664_p7, %p423_p4  ;;  %s384_s21 = sshll.u32 %s1275_s15, 4  ;;  %s385_s21 = int_to_ptr.vmem [resolvable:$true] %s384_s21 }
  0x41   : > { %s1666_s3 = sld [smem:[#allocation25_spill]] }
  0x42   : > { %s1665_s14 = scalar_select %p1436_p8, 1, 0 }
  0x47   : > { %s1021_s27 = scalar_lea.hbm %s1666_s3, 128 }
  0x48   : > { %p1022_p6 = scmp.ne.s32.totalorder %s1666_s3, %s1021_s27  ;;  %p1028_p0 = scmp.lt.s32.totalorder %s1021_s27, %s1021_s27 }
  0x4a   : > { %p1024_p12 = pnand %p1022_p6, %p1419_p5 }
  0x4c   : > { %p1025_p13 = pneg %p1024_p12 }
  0x4e   : > { %p1030_p3 = pnand %p1028_p0, %p1025_p13 }
  0x50   : > { %1033 = shalt.err (!%p1030_p3)
}
  0x51   : > { %s1034_s22 = scalar_lea.vmem %s385_s21, 128  ;;  %s1041_s20 = scalar_lea.vmem %s385_s21, 256 }
  0x52   : > { %p1035_p9 = scmp.ne.s32.totalorder %s385_s21, %s1034_s22  ;;  %p1042_p1 = scmp.lt.s32.totalorder %s385_s21, %s385_s21 }
  0x53   : > { %p1043_p4 = scmp.lt.s32.totalorder %s1041_s20, %s1034_s22 }
  0x54   : > { %p1037_p10 = pnand %p1035_p9, %p1419_p5 }
  0x55   : > { %p1044_p7 = por %p1043_p4, %p1042_p1 }
  0x56   : > { %p1038_p11 = pneg %p1037_p10 }
  0x58   : > { %p1045_p8 = pnand %p1044_p7, %p1038_p11 }
  0x5a   : > { %1048 = shalt.err (!%p1045_p8)
}
  0x5b   : > { %903 = dma.hbm_to_vmem [thread:$0]  (!%p1401_p2), %s1666_s3, 128, %s385_s21, %s1442_s11  }
  0x5c   : > { %s1276_s16 = smov [#allocation2]   ;;  %s1049_s1 = scalar_lea.hbm %s1635_s0, 128 }
  0x5d   : > { %s321_s15 = sshll.u32 %s1276_s16, 4  ;;  %p1050_p6 = scmp.ne.s32.totalorder %s1635_s0, %s1049_s1  ;;  %s322_s15 = int_to_ptr.vmem [resolvable:$true] %s321_s15 }
  0x5e   : > { %p1056_p13 = scmp.lt.s32.totalorder %s1049_s1, %s1049_s1 }
  0x5f   : > { %p1052_p8 = pnand %p1050_p6, %p1419_p5 }
  0x61   : > { %p1053_p12 = pneg %p1052_p8 }
  0x63   : > { %p1058_p0 = pnand %p1056_p13, %p1053_p12 }
  0x65   : > { %1061 = shalt.err (!%p1058_p0)
}
  0x66   : > { %s1062_s20 = scalar_lea.vmem %s322_s15, 128  ;;  %s1069_s21 = scalar_lea.vmem %s322_s15, 256 }
  0x67   : > { %p1063_p3 = scmp.ne.s32.totalorder %s322_s15, %s1062_s20  ;;  %p1070_p11 = scmp.lt.s32.totalorder %s322_s15, %s322_s15 }
  0x68   : > { %p1071_p1 = scmp.lt.s32.totalorder %s1069_s21, %s1062_s20 }
  0x69   : > { %p1065_p9 = pnand %p1063_p3, %p1419_p5 }
  0x6a   : > { %p1072_p4 = por %p1071_p1, %p1070_p11 }
  0x6b   : > { %p1066_p10 = pneg %p1065_p9 }
  0x6d   : > { %p1073_p7 = pnand %p1072_p4, %p1066_p10 }
  0x6f   : > { %1076 = shalt.err (!%p1073_p7)
}
  0x70   : > { %894 = dma.hbm_to_vmem [thread:$0]  (!%p1401_p2), %s1635_s0, 128, %s322_s15, [#allocation3]  }
  0x71   : > { %s1277_s1 = smov [#allocation7]   ;;  %s1077_s10 = scalar_lea.hbm %s1637_s2, 128 }
  0x72   : > { %s363_s30 = sshll.u32 %s1277_s1, 4  ;;  %p1078_p6 = scmp.ne.s32.totalorder %s1637_s2, %s1077_s10  ;;  %s364_s30 = int_to_ptr.vmem [resolvable:$true] %s363_s30 }
  0x73   : > { %p1084_p13 = scmp.lt.s32.totalorder %s1077_s10, %s1077_s10 }
  0x74   : > { %p1080_p8 = pnand %p1078_p6, %p1419_p5 }
  0x76   : > { %p1081_p12 = pneg %p1080_p8 }
  0x78   : > { %p1086_p0 = pnand %p1084_p13, %p1081_p12 }
  0x7a   : > { %1089 = shalt.err (!%p1086_p0)
}
  0x7b   : > { %s1090_s20 = scalar_lea.vmem %s364_s30, 128  ;;  %s1097_s15 = scalar_lea.vmem %s364_s30, 256 }
  0x7c   : > { %p1091_p3 = scmp.ne.s32.totalorder %s364_s30, %s1090_s20  ;;  %p1098_p11 = scmp.lt.s32.totalorder %s364_s30, %s364_s30 }
  0x7d   : > { %p1099_p1 = scmp.lt.s32.totalorder %s1097_s15, %s1090_s20 }
  0x7e   : > { %p1093_p9 = pnand %p1091_p3, %p1419_p5 }
  0x7f   : > { %p1100_p4 = por %p1099_p1, %p1098_p11 }
  0x80   : > { %p1094_p10 = pneg %p1093_p9 }
  0x82   : > { %p1101_p7 = pnand %p1100_p4, %p1094_p10 }
  0x84   : > { %1104 = shalt.err (!%p1101_p7)
}
  0x85   : > { %900 = dma.hbm_to_vmem [thread:$0]  (!%p1401_p2), %s1637_s2, 128, %s364_s30, %s1409_s23  }
  0x86   : > { %s1278_s8 = smov [#allocation10]   ;;  %s1105_s27 = scalar_lea.hbm %s1639_s4, 128 }
  0x87   : > { %s405_s26 = sshll.u32 %s1278_s8, 4  ;;  %p1106_p6 = scmp.ne.s32.totalorder %s1639_s4, %s1105_s27  ;;  %s406_s26 = int_to_ptr.vmem [resolvable:$true] %s405_s26 }
  0x88   : > { %p1112_p13 = scmp.lt.s32.totalorder %s1105_s27, %s1105_s27 }
  0x89   : > { %p1108_p8 = pnand %p1106_p6, %p1419_p5 }
  0x8b   : > { %p1109_p12 = pneg %p1108_p8 }
  0x8d   : > { %p1114_p0 = pnand %p1112_p13, %p1109_p12 }
  0x8f   : > { %1117 = shalt.err (!%p1114_p0)
}
  0x90   : > { %s1118_s20 = scalar_lea.vmem %s406_s26, 128  ;;  %s1125_s23 = scalar_lea.vmem %s406_s26, 256 }
  0x91   : > { %p1119_p3 = scmp.ne.s32.totalorder %s406_s26, %s1118_s20  ;;  %p1126_p11 = scmp.lt.s32.totalorder %s406_s26, %s406_s26 }
  0x92   : > { %p1127_p1 = scmp.lt.s32.totalorder %s1125_s23, %s1118_s20 }
  0x93   : > { %p1121_p9 = pnand %p1119_p3, %p1419_p5 }
  0x94   : > { %p1128_p4 = por %p1127_p1, %p1126_p11 }
  0x95   : > { %p1122_p10 = pneg %p1121_p9 }
  0x97   : > { %p1129_p7 = pnand %p1128_p4, %p1122_p10 }
  0x99   : > { %1132 = shalt.err (!%p1129_p7)
}
  0x9a   : > { %906 = dma.hbm_to_vmem [thread:$0]  (!%p1401_p2), %s1639_s4, 128, %s406_s26, %s1442_s11  }
  0x9b   : > { %p1667_p6 = scmp.ne.s32.totalorder %s1665_s14, 0 }
  0x9c   : > { %s429_s12 = sand.u32 (!%p1667_p6), 1, %s1260_s28   ;;  %p1668_p5 = scmp.ne.s32.totalorder (!%p1667_p6), %s1657_s13, 0 }
  0x9d   : > { %427 = sbr.rel (%p1667_p6) target bundleno = 224 (0xe0), region = 44  ;;  %s1510_s3 = sshll.u32 (!%p1667_p6), %s429_s12, 3 }
  0x9e   : > { %s430_s21 = scalar_lea.sflag (!%p1667_p6), [#allocation3], %s429_s12  ;;  %s433_s8 = scalar_lea.vmem (!%p1667_p6), [#allocation2], %s1510_s3 }
  0xa2   : > { %1222 = dma.done.wait (%p1668_p5), %s430_s21, 128  }
  0xa3   : > { %1224 = vsyncadd (%p1668_p5), %s430_s21, 4294967168  ;;  %s438_s19 = sand.u32 1, %s1360_s9   ;;  %s442_s14 = scalar_lea.vmem [#allocation5], %s1510_s3 }
  0xa4   : > { %s439_s11 = scalar_lea.sflag [#allocation6], %s438_s19 }
  0xa5   : > { %1226 = dma.done.wait (%p1668_p5), %s439_s11, 256  }
  0xa6   : > { %1228 = vsyncadd (%p1668_p5), %s439_s11, 4294967040  ;;  %s451_s26 = scalar_lea.vmem [#allocation7], %s1510_s3  ;;  %s457_s1 = scalar_lea.sflag [#allocation9], %s438_s19 }
  0xa7   : > { %s460_s16 = scalar_lea.vmem [#allocation8], %s1510_s3 }
  0xa8   : > { %1230 = dma.done.wait (%p1668_p5), %s457_s1, 256  }
  0xa9   : > { %1232 = vsyncadd (%p1668_p5), %s457_s1, 4294967040  ;;  %s1530_s9 = sand.u32 1, %s1248_s25   ;;  %v565_v0 = vlaneseq  ;;  %s870_s27 = sshll.u32 %s1264_s29, 3  ;;  %v564_v4 = vld [vmem:[%s460_s16] sm:$0xff] }
  0xaa   : > { %v568_v1 = vstv %s870_s27  ;;  %s864_s10 = sshll.u32 %s1530_s9, 3  ;;  %p548_p2 = scmp.lt.s32.totalorder %s1264_s29, 0  ;;  %v577_v5 = vld [vmem:[%s442_s14] sm:$0xff] }
  0xab   : > { %v566_v2 = vshrl.u32 %v565_v0, 7  ;;  %s873_s13 = sshll.u32 %s1264_s29, 7  ;;  %v579_v6 = vmul.f32 1.4142135, %v577_v5  ;;  %989 = vlog2.f32 %v577_v5  ;;  %s531_s15 = scalar_lea.vmem [#allocation12], %s864_s10 }
  0xac   : > { %s549_s22 = scalar_select %p548_p2, %s1264_s29, 0 }
  0xad   : > { %v569_v3 = vadd.s32 %v568_v1, %v566_v2  ;;  %s1545_s30 = scalar_lea.hbm %s1642_s7, %s873_s13  ;;  %s636_s12 = sshll.u32 %s531_s15, 4  ;;  %v580_v8 = vadd.f32 1e-09, %v579_v6  ;;  %s1549_s12 = int_to_ptr.vmem [resolvable:$true] %s636_s12 }
  0xae   : > { %s1683_s22 = smov (!%p548_p2, %s549_s22), 0  ;;  %s610_s21 = scalar_lea.sflag [#allocation13], %s1530_s9 }
  0xaf   : > { %vm570_vm0 = vcmp.lt.s32.totalorder %v569_v3, 8  ;;  %991 = vrcp.f32 %v580_v8  ;;  %s1133_s19 = scalar_lea.vmem %s1549_s12, 128  ;;  %p1669_p12 = scmp.ne.s32.totalorder %s1659_s17, 0 }
  0xb0   : > { %v572_v7 = vsel %vm570_vm0, %v564_v4, 0.0  ;;  %p1134_p8 = scmp.ne.s32.totalorder %s1549_s12, %s1133_s19  ;;  %s1279_s11 = smov [#allocation12]  }
  0xb1   : > { %575 = vst [vmem:[%s531_s15] sm:$0xff] %v572_v7  ;;  %s1137_s14 = sshll.u32 %s1279_s11, 4  ;;  %s1138_s14 = int_to_ptr.vmem [resolvable:$false] %s1137_s14 }
  0xb2   : > { %p1135_p13 = pnand %p1134_p8, %p1669_p12  ;;  %s1139_s1 = scalar_lea.vmem %s1138_s14, 256 }
  0xb3   : > { %p1140_p3 = scmp.lt.s32.totalorder %s1549_s12, %s1138_s14  ;;  %p1141_p9 = scmp.lt.s32.totalorder %s1139_s1, %s1133_s19 }
  0xb4   : > { %p1136_p0 = pneg %p1135_p13 }
  0xb5   : > { %p1142_p10 = por %p1141_p9, %p1140_p3 }
  0xb7   : > { %p1143_p11 = pnand %p1142_p10, %p1136_p0 }
  0xb9   : > { %1146 = shalt.err (!%p1143_p11)
}
  0xba   : > { %s1147_s16 = scalar_lea.hbm %s1545_s30, 128  ;;  %s1151_s23 = scalar_lea.hbm %s1642_s7, 256 }
  0xbb   : > { %p1148_p1 = scmp.ne.s32.totalorder %s1545_s30, %s1147_s16  ;;  %p1152_p6 = scmp.lt.s32.totalorder %s1545_s30, %s1642_s7 }
  0xbc   : > { %p1153_p5 = scmp.lt.s32.totalorder %s1151_s23, %s1147_s16 }
  0xbd   : > { %p1149_p4 = pnand %p1148_p1, %p1669_p12 }
  0xbe   : > { %p1154_p2 = por %p1153_p5, %p1152_p6 }
  0xbf   : > { %p1150_p7 = pneg %p1149_p4 }
  0xc1   : > { %p1155_p8 = pnand %p1154_p2, %p1150_p7 }
  0xc3   : > { %1158 = shalt.err (!%p1155_p8)
}
  0xc4   : > { %888 = dma.vmem_to_hbm [thread:$0]  (%p1669_p12), %s1549_s12, 128, %s1545_s30, %s610_s21   ;;  %v576_v9 = vld [vmem:[%s433_s8] sm:$0xff]  ;;  %v990_v12 = vpop.eup %989 }
  0xc5   : > { %v578_v10 = vld [vmem:[%s451_s26] sm:$0xff]  ;;  %s869_s19 = sshll.u32 %s1683_s22, 3  ;;  %s469_s27 = scalar_lea.vmem [#allocation10], %s1510_s3  ;;  %v583_v15 = vmul.f32 0.6931472, %v990_v12  ;;  %v992_v19 = vpop.eup %991 }
  0xc6   : > { %v585_v11 = vsub.f32 %v578_v10, %v576_v9  ;;  %s553_s16 = scalar_lea.vmem %s1640_s5, %s869_s19  ;;  %v595_v13 = vld [vmem:[%s469_s27] sm:$0xff]  ;;  %s524_s3 = scalar_lea.vmem [#allocation11], %s864_s10 }
  0xc7   : > { %v596_v14 = vld [vmem:[%s553_s16] sm:$0xff]  ;;  %v584_v17 = vadd.f32 0.9189385, %v583_v15  ;;  %s623_s8 = sshll.u32 %s524_s3, 4  ;;  %s621_s30 = scalar_lea.hbm %s1641_s6, %s873_s13  ;;  %s624_s8 = int_to_ptr.vmem [resolvable:$true] %s623_s8 }
  0xc8   : > { %v586_v16 = vand.u32 2147483647, %v585_v11  ;;  %v597_v18 = vmul.f32 %v596_v14, %v595_v13  ;;  %s605_s12 = scalar_lea.sflag [#allocation4], %s1530_s9  ;;  %s1159_s21 = scalar_lea.vmem %s624_s8, 128 }
  0xc9   : > { %p1160_p13 = scmp.ne.s32.totalorder %s624_s8, %s1159_s21  ;;  %s1280_s20 = smov [#allocation11]  }
  0xca   : > { %v587_v20 = vmul.f32 %v992_v19, %v586_v16  ;;  %v598_v22 = vsel %vm570_vm0, %v597_v18, 0.0  ;;  %s1163_s23 = sshll.u32 %s1280_s20, 4  ;;  %s1164_s23 = int_to_ptr.vmem [resolvable:$false] %s1163_s23 }
  0xcb   : > { %v599_v24 = vmul.f32 2.0, %v598_v22  ;;  %p1161_p0 = pnand %p1160_p13, %p1669_p12  ;;  %s1165_s15 = scalar_lea.vmem %s1164_s23, 256 }
  0xcc   : > { %v588_v21 = vadd.f32 %v587_v20, %v584_v17  ;;  %p1166_p9 = scmp.lt.s32.totalorder %s624_s8, %s1164_s23  ;;  %p1167_p10 = scmp.lt.s32.totalorder %s1165_s15, %s1159_s21 }
  0xcd   : > { %p1162_p3 = pneg %p1161_p0 }
  0xce   : > { %v589_v23 = vmul.f32 %v588_v21, %v564_v4  ;;  %p1168_p11 = por %p1167_p10, %p1166_p9 }
  0xd0   : > { %v590_v25 = vsel %vm570_vm0, %v589_v23, 0.0  ;;  %p1169_p1 = pnand %p1168_p11, %p1162_p3 }
  0xd1   : > { %v602_v26 = vadd.f32 %v599_v24, %v590_v25 }
  0xd3   : > { %603 = vst [vmem:[%s524_s3] sm:$0xff] %v602_v26 }
  0xd4   : > { %1172 = shalt.err (!%p1169_p1)
}
  0xd5   : > { %s1173_s29 = scalar_lea.hbm %s621_s30, 128  ;;  %s1177_s13 = scalar_lea.hbm %s1641_s6, 256 }
  0xd6   : > { %p1174_p4 = scmp.ne.s32.totalorder %s621_s30, %s1173_s29  ;;  %p1178_p5 = scmp.lt.s32.totalorder %s621_s30, %s1641_s6 }
  0xd7   : > { %p1179_p2 = scmp.lt.s32.totalorder %s1177_s13, %s1173_s29 }
  0xd8   : > { %p1175_p7 = pnand %p1174_p4, %p1669_p12 }
  0xd9   : > { %p1180_p8 = por %p1179_p2, %p1178_p5 }
  0xda   : > { %p1176_p6 = pneg %p1175_p7 }
  0xdc   : > { %p1181_p13 = pnand %p1180_p8, %p1176_p6 }
  0xde   : > { %1184 = shalt.err (!%p1181_p13)
}
  0xdf   : > { %887 = dma.vmem_to_hbm [thread:$0]  (%p1669_p12), %s624_s8, 128, %s621_s30, %s605_s12  }
  0xe0 PF: > { %s1670_s14 = sld [smem:[#allocation21_spill]]  ;;  %s648_s1 = sand.u32 1, %s1244_s24  }
  0xe1   : > { %p1671_p0 = scmp.ne.s32.totalorder %s1660_s18, 0  ;;  %s649_s16 = scalar_lea.sflag [#allocation4], %s648_s1 }
  0xe6   : > { %p1672_p3 = scmp.ge.s32.totalorder %s1670_s14, 2 }
  0xe8   : > { %p908_p9 = pnand %p1672_p3, %p1671_p0 }
  0xea   : > { %p909_p10 = pneg %p908_p9 }
  0xec   : > { %1234 = dma.done.wait (%p909_p10), %s649_s16, 128  }
  0xed   : > { %1236 = vsyncadd (%p909_p10), %s649_s16, 4294967168  ;;  %s658_s27 = scalar_lea.sflag [#allocation13], %s648_s1 }
  0xee   : > { %1238 = dma.done.wait (%p909_p10), %s658_s27, 128  }
  0xef   : > { %1240 = vsyncadd (%p909_p10), %s658_s27, 4294967168  ;;  %s33_s8 = sadd.s32 1, %s1670_s14   ;;  %s1673_s17 = sld [smem:[#allocation19_spill]] }
  0xf0   : > { %p30_p11 = scmp.ge.s32.totalorder %s33_s8, 4   ;;  %s1674_s26 = sld [smem:[#allocation23_spill]] }
  0xf1   : > { %s1675_s29 = sld [smem:[#allocation20_spill]]  ;;  %s1677_s24 = smov %s1248_s25 }
  0xf2   : > { %s1676_s30 = sld [smem:[#allocation22_spill]]  ;;  %s1679_s27 = smov %s1260_s28 }
  0xf3   : > { %s1625_s28 = smov 0   ;;  %32 = sbr.rel (!%p30_p11) target bundleno = 16 (0x10), region = 161 }
  0xf5   : > { %s1678_s25 = smov %s1673_s17 }
  0xf8   :  { %663 = vsyncpa [#allocation3], 1 }
  0xf9   :  { %665 = vsyncpa [#allocation3 + $0x1], 1 }
  0xfa   :  { %666 = vsyncpa [#allocation6], 1 }
  0xfb   :  { %668 = vsyncpa [#allocation6 + $0x1], 1 }
  0xfc   :  { %669 = vsyncpa [#allocation9], 1 }
  0xfd   :  { %671 = vsyncpa [#allocation9 + $0x1], 1 }
  0xfe   :  { %672 = vsyncpa [#allocation4], 1 }
  0xff   :  { %674 = vsyncpa [#allocation4 + $0x1], 1 }
 0x100   :  { %675 = vsyncpa [#allocation13], 1 }
 0x101   :  { %677 = vsyncpa [#allocation13 + $0x1], 1 }

</bundles_post_ra>
